<compile_context>
chip_gen: v7x
topology: tpu7x:2x2x1
jax: 0.10.0
libtpu: 0.0.40
codegen_flags: <defaults>
</compile_context>

<pallas_src>
import jax
import jax.numpy as jnp
from jax.experimental import pallas as pl
from jax.experimental.pallas import tpu as pltpu

# Model dims (synthetic init, not a checkpoint load).
NUM_LAYERS = 2
INPUT_SIZE = 32
HIDDEN = 32
GATES = 4 * HIDDEN                   # 128 -> exactly one vreg of lanes
ACTOR_DIMS = (64, 32)
NUM_ACTIONS = 12
LANES = 128

# Weight-slab row offsets (every section starts on an 8-row / sublane boundary).
R_WIH0 = 0                                    # (INPUT_SIZE, 128)
R_WHH0 = R_WIH0 + INPUT_SIZE                  # 32:  (HIDDEN, 128)
R_WIH1 = R_WHH0 + HIDDEN                      # 64:  (HIDDEN, 128)
R_WHH1 = R_WIH1 + HIDDEN                      # 96:  (HIDDEN, 128)
R_B0 = 128                                    # 1 row (b_ih0 + b_hh0)
R_B1 = 136                                    # 1 row (b_ih1 + b_hh1)
R_AW0 = 144                                   # (HIDDEN, 128), cols 0:64 valid
R_AB0 = R_AW0 + HIDDEN                        # 176
R_AW1 = 184                                   # (128, 128), rows 0:64 / cols 0:32 valid
R_AB1 = R_AW1 + LANES                         # 312
R_AW2 = 320                                   # (128, 128), rows 0:32 / cols 0:12 valid
R_AB2 = R_AW2 + LANES                         # 448
W_ROWS = 456                                  # multiple of 8


def lstm_policy_kernel(x_ref, h_init_ref, c_init_ref, w_ref,
                       act_ref, hc_ref,
                       h0_scr, h1_scr, c0_scr, c1_scr):
    f32 = jnp.float32
    H = HIDDEN
    t = pl.program_id(0)

    # Load the module's registered-buffer state into the VMEM carry on the first step.
    @pl.when(t == 0)
    def _():
        h0_scr[...] = h_init_ref[0]
        h1_scr[...] = h_init_ref[1]
        c0_scr[...] = c_init_ref[0]
        c1_scr[...] = c_init_ref[1]

    # Lane mask selecting the 'g' (cell candidate) quarter of the 128-lane gates vreg.
    lane = jax.lax.broadcasted_iota(jnp.int32, (1, GATES), 1)
    is_g = jnp.logical_and(lane >= 2 * H, lane < 3 * H)

    def gate_act(gates):
        # sigmoid(x) = 0.5*(1 + tanh(x/2)): one full-width tanh covers all four gates.
        tt = jnp.tanh(jnp.where(is_g, gates, 0.5 * gates))
        return jnp.where(is_g, tt, 0.5 * (tt + 1.0))

    def elu(x):
        # exp clamped at 0 so the discarded branch never overflows.
        return jnp.where(x > 0, x, jnp.exp(jnp.minimum(x, 0.0)) - 1.0)

    x = x_ref[0]                       # (1, INPUT_SIZE)
    h0_prev = h0_scr[...]
    h1_prev = h1_scr[...]
    c0_prev = c0_scr[...]
    c1_prev = c1_scr[...]

    # LSTM layer 0: two small matmuls (no lane concatenate on the critical path).
    gates0 = (jnp.dot(x, w_ref[R_WIH0:R_WIH0 + INPUT_SIZE, :], preferred_element_type=f32)
              + jnp.dot(h0_prev, w_ref[R_WHH0:R_WHH0 + H, :], preferred_element_type=f32)
              + w_ref[R_B0:R_B0 + 1, :])                           # (1, 4H) = [i|f|g|o]
    a0 = gate_act(gates0)
    c0_new = a0[:, H:2 * H] * c0_prev + a0[:, 0:H] * a0[:, 2 * H:3 * H]
    h0_new = a0[:, 3 * H:4 * H] * jnp.tanh(c0_new)

    # LSTM layer 1: the h1_prev matmul depends only on carry state (issues early).
    gates1 = (jnp.dot(h0_new, w_ref[R_WIH1:R_WIH1 + H, :], preferred_element_type=f32)
              + jnp.dot(h1_prev, w_ref[R_WHH1:R_WHH1 + H, :], preferred_element_type=f32)
              + w_ref[R_B1:R_B1 + 1, :])
    a1 = gate_act(gates1)
    c1_new = a1[:, H:2 * H] * c1_prev + a1[:, 0:H] * a1[:, 2 * H:3 * H]
    h1_new = a1[:, 3 * H:4 * H] * jnp.tanh(c1_new)

    # Actor MLP; weights are column-padded to 128 lanes so every dot output is a full vreg
    # (padded lanes stay exactly 0 through the ELUs).
    z = elu(jnp.dot(h1_new, w_ref[R_AW0:R_AW0 + H, :], preferred_element_type=f32)
            + w_ref[R_AB0:R_AB0 + 1, :])
    z = elu(jnp.dot(z, w_ref[R_AW1:R_AW1 + LANES, :], preferred_element_type=f32)
            + w_ref[R_AB1:R_AB1 + 1, :])
    act = (jnp.dot(z, w_ref[R_AW2:R_AW2 + LANES, :], preferred_element_type=f32)
           + w_ref[R_AB2:R_AB2 + 1, :])                            # (1, 128); lanes >= 12 are 0

    # Per-step output: one lane-dense unmasked 128-lane store.
    act_ref[0] = act

    # Carry state to the next grid step.
    h0_scr[...] = h0_new
    h1_scr[...] = h1_new
    c0_scr[...] = c0_new
    c1_scr[...] = c1_new

    # Final (h, c) written once, on the last step, into a small resident output block.
    @pl.when(t == pl.num_programs(0) - 1)
    def _():
        hc_ref[0] = h0_new
        hc_ref[1] = h1_new
        hc_ref[2] = c0_new
        hc_ref[3] = c1_new


def pack_params(p):
    """Pack all weights/biases into one (W_ROWS, 128) f32 slab (done once, outside the kernel)."""
    w = jnp.zeros((W_ROWS, LANES), jnp.float32)
    w = w.at[R_WIH0:R_WIH0 + INPUT_SIZE, :].set(p["wih0"])
    w = w.at[R_WHH0:R_WHH0 + HIDDEN, :].set(p["whh0"])
    w = w.at[R_WIH1:R_WIH1 + HIDDEN, :].set(p["wih1"])
    w = w.at[R_WHH1:R_WHH1 + HIDDEN, :].set(p["whh1"])
    w = w.at[R_B0, :].set(p["b0"][0])
    w = w.at[R_B1, :].set(p["b1"][0])
    w = w.at[R_AW0:R_AW0 + HIDDEN, :ACTOR_DIMS[0]].set(p["aw0"])
    w = w.at[R_AB0, :ACTOR_DIMS[0]].set(p["ab0"][0])
    w = w.at[R_AW1:R_AW1 + ACTOR_DIMS[0], :ACTOR_DIMS[1]].set(p["aw1"])
    w = w.at[R_AB1, :ACTOR_DIMS[1]].set(p["ab1"][0])
    w = w.at[R_AW2:R_AW2 + ACTOR_DIMS[1], :NUM_ACTIONS].set(p["aw2"])
    w = w.at[R_AB2, :NUM_ACTIONS].set(p["ab2"][0])
    return w


def policy_rollout(x_seq, h0, c0, w_slab):
    """x_seq: (T, 1, INPUT_SIZE); h0, c0: (NUM_LAYERS, 1, HIDDEN).

    Equivalent to calling PolicyExporterLSTM.forward T times in sequence (state carried).
    Returns (actions (T, NUM_ACTIONS), h_new, c_new)."""
    T = x_seq.shape[0]
    flops_per_step = (2 * INPUT_SIZE * GATES + 2 * HIDDEN * GATES        # layer 0
                      + 4 * HIDDEN * GATES                               # layer 1
                      + 2 * HIDDEN * LANES + 4 * LANES * LANES)          # actor MLP
    act_slab, hc = pl.pallas_call(
        lstm_policy_kernel,
        out_shape=(
            jax.ShapeDtypeStruct((T, 1, LANES), jnp.float32),
            jax.ShapeDtypeStruct((2 * NUM_LAYERS, 1, HIDDEN), jnp.float32),
        ),
        grid=(T,),
        in_specs=[
            pl.BlockSpec((1, 1, INPUT_SIZE), lambda t: (t, 0, 0)),              # x_t
            pl.BlockSpec((NUM_LAYERS, 1, HIDDEN), lambda t: (0, 0, 0)),         # h0 (resident)
            pl.BlockSpec((NUM_LAYERS, 1, HIDDEN), lambda t: (0, 0, 0)),         # c0 (resident)
            pl.BlockSpec((W_ROWS, LANES), lambda t: (0, 0)),                    # weights (resident)
        ],
        out_specs=[
            pl.BlockSpec((1, 1, LANES), lambda t: (t, 0, 0)),                   # per-step action
            pl.BlockSpec((2 * NUM_LAYERS, 1, HIDDEN), lambda t: (0, 0, 0)),     # final h/c
        ],
        scratch_shapes=[pltpu.VMEM((1, HIDDEN), jnp.float32)] * 4,              # h0,h1,c0,c1 carry
        compiler_params=pltpu.CompilerParams(
            dimension_semantics=("arbitrary",)),
        cost_estimate=pl.CostEstimate(
            flops=T * flops_per_step,
            transcendentals=T * (2 * GATES + 2 * HIDDEN + 2 * LANES),
            bytes_accessed=W_ROWS * LANES * 4
                           + T * (INPUT_SIZE + LANES) * 4
                           + 4 * NUM_LAYERS * HIDDEN * 4),
    )(x_seq, h0, c0, w_slab)
    actions = act_slab[:, 0, :NUM_ACTIONS]           # one slice per rollout (amortized)
    h_new = hc[0:NUM_LAYERS]
    c_new = hc[NUM_LAYERS:2 * NUM_LAYERS]
    return actions, h_new, c_new


def reference_rollout(x_seq, h0, c0, params):
    """Pure-JAX reference: T sequential single-step forwards with PyTorch LSTM + ELU-MLP semantics."""
    H = HIDDEN
    h, c = h0, c0
    acts = []
    lw = ((params["wih0"], params["whh0"], params["b0"]),
          (params["wih1"], params["whh1"], params["b1"]))
    for t in range(x_seq.shape[0]):
        inp = x_seq[t]
        h_new, c_new = [], []
        for l in range(NUM_LAYERS):
            wih, whh, b = lw[l]
            gates = inp @ wih + h[l] @ whh + b
            i = jax.nn.sigmoid(gates[:, 0 * H:1 * H])
            f = jax.nn.sigmoid(gates[:, 1 * H:2 * H])
            g = jnp.tanh(gates[:, 2 * H:3 * H])
            o = jax.nn.sigmoid(gates[:, 3 * H:4 * H])
            cc = f * c[l] + i * g
            hh = o * jnp.tanh(cc)
            h_new.append(hh)
            c_new.append(cc)
            inp = hh
        h, c = jnp.stack(h_new), jnp.stack(c_new)
        z = jax.nn.elu(inp @ params["aw0"] + params["ab0"])
        z = jax.nn.elu(z @ params["aw1"] + params["ab1"])
        acts.append(z @ params["aw2"] + params["ab2"])
    return jnp.concatenate(acts, axis=0), h, c


def init_params(key):
    ks = jax.random.split(key, 12)
    u = lambda k, shape: jax.random.uniform(k, shape, jnp.float32, -0.1, 0.1)
    return {
        # LSTM layer 0 (input -> hidden), weights transposed to (in, 4H); gate order i,f,g,o
        "wih0": u(ks[0], (INPUT_SIZE, 4 * HIDDEN)),
        "whh0": u(ks[1], (HIDDEN, 4 * HIDDEN)),
        "b0":   u(ks[2], (1, 4 * HIDDEN)),     # b_ih + b_hh folded together
        # LSTM layer 1 (hidden -> hidden)
        "wih1": u(ks[3], (HIDDEN, 4 * HIDDEN)),
        "whh1": u(ks[4], (HIDDEN, 4 * HIDDEN)),
        "b1":   u(ks[5], (1, 4 * HIDDEN)),
        # Actor MLP
        "aw0": u(ks[6], (HIDDEN, ACTOR_DIMS[0])),
        "ab0": u(ks[7], (1, ACTOR_DIMS[0])),
        "aw1": u(ks[8], (ACTOR_DIMS[0], ACTOR_DIMS[1])),
        "ab1": u(ks[9], (1, ACTOR_DIMS[1])),
        "aw2": u(ks[10], (ACTOR_DIMS[1], NUM_ACTIONS)),
        "ab2": u(ks[11], (1, NUM_ACTIONS)),
    }


if __name__ == "__main__":
    key = jax.random.PRNGKey(0)
    kp, kx, kh, kc = jax.random.split(key, 4)
    params = init_params(kp)
    w_slab = pack_params(params)      # packed once; reused for every rollout

    T = 8
    x_seq = jax.random.normal(kx, (T, 1, INPUT_SIZE), jnp.float32)
    # Registered buffers start at zero; use small random values to also exercise the state path.
    h0 = 0.1 * jax.random.normal(kh, (NUM_LAYERS, 1, HIDDEN), jnp.float32)
    c0 = 0.1 * jax.random.normal(kc, (NUM_LAYERS, 1, HIDDEN), jnp.float32)

    fwd = jax.jit(policy_rollout)
    acts, h1, c1 = jax.block_until_ready(fwd(x_seq, h0, c0, w_slab))
    acts_ref, h_ref, c_ref = reference_rollout(x_seq, h0, c0, params)

    assert acts.shape == (T, NUM_ACTIONS)
    assert bool(jnp.allclose(acts, acts_ref, atol=1e-5, rtol=1e-4))
    assert bool(jnp.allclose(h1, h_ref, atol=1e-5, rtol=1e-4))
    assert bool(jnp.allclose(c1, c_ref, atol=1e-5, rtol=1e-4))

    print("KERNEL_OK")
</pallas_src>

<mosaic_0001>
module attributes {stable_mosaic.version = 11 : i64} {
  func.func @lstm_policy_kernel(%arg0: i32, %arg1: memref<1x1x32xf32, #tpu.memory_space<vmem>>, %arg2: memref<2x1x32xf32, #tpu.memory_space<vmem>>, %arg3: memref<2x1x32xf32, #tpu.memory_space<vmem>>, %arg4: memref<456x128xf32, #tpu.memory_space<vmem>>, %arg5: memref<1x1x128xf32, #tpu.memory_space<vmem>>, %arg6: memref<4x1x32xf32, #tpu.memory_space<vmem>>, %arg7: memref<1x32xf32, #tpu.memory_space<vmem>>, %arg8: memref<1x32xf32, #tpu.memory_space<vmem>>, %arg9: memref<1x32xf32, #tpu.memory_space<vmem>>, %arg10: memref<1x32xf32, #tpu.memory_space<vmem>>) attributes {dimension_semantics = [#tpu.dimension_semantics<arbitrary>], iteration_bounds = array<i64: 8>, scalar_prefetch = 0 : i64, scratch_operands = 4 : i64, tpu.core_type = #tpu.core_type<tc>, window_params = [{transform_indices = @transform_0, window_bounds = array<i64: 1, 1, 32>}, {pipeline_mode = #tpu.pipeline_mode<synchronous>, transform_indices = @transform_1, window_bounds = array<i64: 2, 1, 32>}, {pipeline_mode = #tpu.pipeline_mode<synchronous>, transform_indices = @transform_2, window_bounds = array<i64: 2, 1, 32>}, {pipeline_mode = #tpu.pipeline_mode<synchronous>, transform_indices = @transform_3, window_bounds = array<i64: 456, 128>}, {transform_indices = @transform_4, window_bounds = array<i64: 1, 1, 128>}, {pipeline_mode = #tpu.pipeline_mode<synchronous>, transform_indices = @transform_5, window_bounds = array<i64: 4, 1, 32>}]} {
    %c0_i32 = arith.constant 0 : i32
    %0 = arith.cmpi eq, %arg0, %c0_i32 : i32
    %1 = arith.extui %0 : i1 to i32
    %c0_i32_0 = arith.constant 0 : i32
    %2 = arith.cmpi ne, %1, %c0_i32_0 : i32
    scf.if %2 {
      %c0_54 = arith.constant 0 : index
      %c0_55 = arith.constant 0 : index
      %c0_56 = arith.constant 0 : index
      %103 = vector.load %arg2[%c0_54, %c0_55, %c0_56] : memref<2x1x32xf32, #tpu.memory_space<vmem>>, vector<1x1x32xf32>
      %104 = vector.shape_cast %103 : vector<1x1x32xf32> to vector<1x32xf32>
      %c0_57 = arith.constant 0 : index
      %c0_58 = arith.constant 0 : index
      %105 = vector.load %arg7[%c0_57, %c0_58] : memref<1x32xf32, #tpu.memory_space<vmem>>, vector<1x32xf32>
      tpu.vector_store %arg7[%c0_57, %c0_58], %104 {strides = array<i32>} : memref<1x32xf32, #tpu.memory_space<vmem>>, vector<1x32xf32>,
      %c1 = arith.constant 1 : index
      %c0_59 = arith.constant 0 : index
      %c0_60 = arith.constant 0 : index
      %106 = vector.load %arg2[%c1, %c0_59, %c0_60] : memref<2x1x32xf32, #tpu.memory_space<vmem>>, vector<1x1x32xf32>
      %107 = vector.shape_cast %106 : vector<1x1x32xf32> to vector<1x32xf32>
      %c0_61 = arith.constant 0 : index
      %c0_62 = arith.constant 0 : index
      %108 = vector.load %arg8[%c0_61, %c0_62] : memref<1x32xf32, #tpu.memory_space<vmem>>, vector<1x32xf32>
      tpu.vector_store %arg8[%c0_61, %c0_62], %107 {strides = array<i32>} : memref<1x32xf32, #tpu.memory_space<vmem>>, vector<1x32xf32>,
      %c0_63 = arith.constant 0 : index
      %c0_64 = arith.constant 0 : index
      %c0_65 = arith.constant 0 : index
      %109 = vector.load %arg3[%c0_63, %c0_64, %c0_65] : memref<2x1x32xf32, #tpu.memory_space<vmem>>, vector<1x1x32xf32>
      %110 = vector.shape_cast %109 : vector<1x1x32xf32> to vector<1x32xf32>
      %c0_66 = arith.constant 0 : index
      %c0_67 = arith.constant 0 : index
      %111 = vector.load %arg9[%c0_66, %c0_67] : memref<1x32xf32, #tpu.memory_space<vmem>>, vector<1x32xf32>
      tpu.vector_store %arg9[%c0_66, %c0_67], %110 {strides = array<i32>} : memref<1x32xf32, #tpu.memory_space<vmem>>, vector<1x32xf32>,
      %c1_68 = arith.constant 1 : index
      %c0_69 = arith.constant 0 : index
      %c0_70 = arith.constant 0 : index
      %112 = vector.load %arg3[%c1_68, %c0_69, %c0_70] : memref<2x1x32xf32, #tpu.memory_space<vmem>>, vector<1x1x32xf32>
      %113 = vector.shape_cast %112 : vector<1x1x32xf32> to vector<1x32xf32>
      %c0_71 = arith.constant 0 : index
      %c0_72 = arith.constant 0 : index
      %114 = vector.load %arg10[%c0_71, %c0_72] : memref<1x32xf32, #tpu.memory_space<vmem>>, vector<1x32xf32>
      tpu.vector_store %arg10[%c0_71, %c0_72], %113 {strides = array<i32>} : memref<1x32xf32, #tpu.memory_space<vmem>>, vector<1x32xf32>,
    } else {
    }
    %3 = tpu.iota {dimensions = array<i32: 1>} : vector<1x128xi32>
    %c64_i32 = arith.constant 64 : i32
    %4 = vector.broadcast %c64_i32 : i32 to vector<1x128xi32>
    %5 = arith.cmpi sge, %3, %4 : vector<1x128xi32>
    %c96_i32 = arith.constant 96 : i32
    %6 = vector.broadcast %c96_i32 : i32 to vector<1x128xi32>
    %7 = arith.cmpi slt, %3, %6 : vector<1x128xi32>
    %8 = arith.andi %5, %7 : vector<1x128xi1>
    %c0 = arith.constant 0 : index
    %c0_1 = arith.constant 0 : index
    %c0_2 = arith.constant 0 : index
    %9 = vector.load %arg1[%c0, %c0_1, %c0_2] : memref<1x1x32xf32, #tpu.memory_space<vmem>>, vector<1x1x32xf32>
    %10 = vector.shape_cast %9 : vector<1x1x32xf32> to vector<1x32xf32>
    %c0_3 = arith.constant 0 : index
    %c0_4 = arith.constant 0 : index
    %11 = vector.load %arg7[%c0_3, %c0_4] : memref<1x32xf32, #tpu.memory_space<vmem>>, vector<1x32xf32>
    %c0_5 = arith.constant 0 : index
    %c0_6 = arith.constant 0 : index
    %12 = vector.load %arg8[%c0_5, %c0_6] : memref<1x32xf32, #tpu.memory_space<vmem>>, vector<1x32xf32>
    %c0_7 = arith.constant 0 : index
    %c0_8 = arith.constant 0 : index
    %13 = vector.load %arg9[%c0_7, %c0_8] : memref<1x32xf32, #tpu.memory_space<vmem>>, vector<1x32xf32>
    %c0_9 = arith.constant 0 : index
    %c0_10 = arith.constant 0 : index
    %14 = vector.load %arg10[%c0_9, %c0_10] : memref<1x32xf32, #tpu.memory_space<vmem>>, vector<1x32xf32>
    %c0_11 = arith.constant 0 : index
    %c0_12 = arith.constant 0 : index
    %15 = vector.load %arg4[%c0_11, %c0_12] : memref<456x128xf32, #tpu.memory_space<vmem>>, vector<32x128xf32>
    %cst = arith.constant dense<0.000000e+00> : vector<1x128xf32>
    %16 = tpu.matmul %10, %15, %cst {dimension_numbers = #tpu.dot_dimension_numbers<[1], [0], [0], [1], [0, 0, 1, 1], [], []>} : vector<1x32xf32>, vector<32x128xf32>, vector<1x128xf32> -> vector<1x128xf32>
    %c32 = arith.constant 32 : index
    %c0_13 = arith.constant 0 : index
    %17 = vector.load %arg4[%c32, %c0_13] : memref<456x128xf32, #tpu.memory_space<vmem>>, vector<32x128xf32>
    %cst_14 = arith.constant dense<0.000000e+00> : vector<1x128xf32>
    %18 = tpu.matmul %11, %17, %cst_14 {dimension_numbers = #tpu.dot_dimension_numbers<[1], [0], [0], [1], [0, 0, 1, 1], [], []>} : vector<1x32xf32>, vector<32x128xf32>, vector<1x128xf32> -> vector<1x128xf32>
    %19 = arith.addf %16, %18 : vector<1x128xf32>
    %c128 = arith.constant 128 : index
    %c0_15 = arith.constant 0 : index
    %20 = vector.load %arg4[%c128, %c0_15] : memref<456x128xf32, #tpu.memory_space<vmem>>, vector<1x128xf32>
    %21 = arith.addf %19, %20 : vector<1x128xf32>
    %cst_16 = arith.constant 5.000000e-01 : f32
    %22 = vector.broadcast %cst_16 : f32 to vector<1x128xf32>
    %23 = arith.mulf %22, %21 : vector<1x128xf32>
    %24 = arith.select %8, %21, %23 : vector<1x128xi1>, vector<1x128xf32>
    %25 = math.tanh %24 : vector<1x128xf32>
    %cst_17 = arith.constant 1.000000e+00 : f32
    %26 = vector.broadcast %cst_17 : f32 to vector<1x128xf32>
    %27 = arith.addf %25, %26 : vector<1x128xf32>
    %cst_18 = arith.constant 5.000000e-01 : f32
    %28 = vector.broadcast %cst_18 : f32 to vector<1x128xf32>
    %29 = arith.mulf %28, %27 : vector<1x128xf32>
    %30 = arith.select %8, %25, %29 : vector<1x128xi1>, vector<1x128xf32>
    %31 = vector.extract_strided_slice %30 {offsets = [0, 32], sizes = [1, 32], strides = [1, 1]} : vector<1x128xf32> to vector<1x32xf32>
    %32 = arith.mulf %31, %13 : vector<1x32xf32>
    %33 = vector.extract_strided_slice %30 {offsets = [0, 0], sizes = [1, 32], strides = [1, 1]} : vector<1x128xf32> to vector<1x32xf32>
    %34 = vector.extract_strided_slice %30 {offsets = [0, 64], sizes = [1, 32], strides = [1, 1]} : vector<1x128xf32> to vector<1x32xf32>
    %35 = arith.mulf %33, %34 : vector<1x32xf32>
    %36 = arith.addf %32, %35 : vector<1x32xf32>
    %37 = vector.extract_strided_slice %30 {offsets = [0, 96], sizes = [1, 32], strides = [1, 1]} : vector<1x128xf32> to vector<1x32xf32>
    %38 = math.tanh %36 : vector<1x32xf32>
    %39 = arith.mulf %37, %38 : vector<1x32xf32>
    %c64 = arith.constant 64 : index
    %c0_19 = arith.constant 0 : index
    %40 = vector.load %arg4[%c64, %c0_19] : memref<456x128xf32, #tpu.memory_space<vmem>>, vector<32x128xf32>
    %cst_20 = arith.constant dense<0.000000e+00> : vector<1x128xf32>
    %41 = tpu.matmul %39, %40, %cst_20 {dimension_numbers = #tpu.dot_dimension_numbers<[1], [0], [0], [1], [0, 0, 1, 1], [], []>} : vector<1x32xf32>, vector<32x128xf32>, vector<1x128xf32> -> vector<1x128xf32>
    %c96 = arith.constant 96 : index
    %c0_21 = arith.constant 0 : index
    %42 = vector.load %arg4[%c96, %c0_21] : memref<456x128xf32, #tpu.memory_space<vmem>>, vector<32x128xf32>
    %cst_22 = arith.constant dense<0.000000e+00> : vector<1x128xf32>
    %43 = tpu.matmul %12, %42, %cst_22 {dimension_numbers = #tpu.dot_dimension_numbers<[1], [0], [0], [1], [0, 0, 1, 1], [], []>} : vector<1x32xf32>, vector<32x128xf32>, vector<1x128xf32> -> vector<1x128xf32>
    %44 = arith.addf %41, %43 : vector<1x128xf32>
    %c136 = arith.constant 136 : index
    %c0_23 = arith.constant 0 : index
    %45 = vector.load %arg4[%c136, %c0_23] : memref<456x128xf32, #tpu.memory_space<vmem>>, vector<1x128xf32>
    %46 = arith.addf %44, %45 : vector<1x128xf32>
    %cst_24 = arith.constant 5.000000e-01 : f32
    %47 = vector.broadcast %cst_24 : f32 to vector<1x128xf32>
    %48 = arith.mulf %47, %46 : vector<1x128xf32>
    %49 = arith.select %8, %46, %48 : vector<1x128xi1>, vector<1x128xf32>
    %50 = math.tanh %49 : vector<1x128xf32>
    %cst_25 = arith.constant 1.000000e+00 : f32
    %51 = vector.broadcast %cst_25 : f32 to vector<1x128xf32>
    %52 = arith.addf %50, %51 : vector<1x128xf32>
    %cst_26 = arith.constant 5.000000e-01 : f32
    %53 = vector.broadcast %cst_26 : f32 to vector<1x128xf32>
    %54 = arith.mulf %53, %52 : vector<1x128xf32>
    %55 = arith.select %8, %50, %54 : vector<1x128xi1>, vector<1x128xf32>
    %56 = vector.extract_strided_slice %55 {offsets = [0, 32], sizes = [1, 32], strides = [1, 1]} : vector<1x128xf32> to vector<1x32xf32>
    %57 = arith.mulf %56, %14 : vector<1x32xf32>
    %58 = vector.extract_strided_slice %55 {offsets = [0, 0], sizes = [1, 32], strides = [1, 1]} : vector<1x128xf32> to vector<1x32xf32>
    %59 = vector.extract_strided_slice %55 {offsets = [0, 64], sizes = [1, 32], strides = [1, 1]} : vector<1x128xf32> to vector<1x32xf32>
    %60 = arith.mulf %58, %59 : vector<1x32xf32>
    %61 = arith.addf %57, %60 : vector<1x32xf32>
    %62 = vector.extract_strided_slice %55 {offsets = [0, 96], sizes = [1, 32], strides = [1, 1]} : vector<1x128xf32> to vector<1x32xf32>
    %63 = math.tanh %61 : vector<1x32xf32>
    %64 = arith.mulf %62, %63 : vector<1x32xf32>
    %c144 = arith.constant 144 : index
    %c0_27 = arith.constant 0 : index
    %65 = vector.load %arg4[%c144, %c0_27] : memref<456x128xf32, #tpu.memory_space<vmem>>, vector<32x128xf32>
    %cst_28 = arith.constant dense<0.000000e+00> : vector<1x128xf32>
    %66 = tpu.matmul %64, %65, %cst_28 {dimension_numbers = #tpu.dot_dimension_numbers<[1], [0], [0], [1], [0, 0, 1, 1], [], []>} : vector<1x32xf32>, vector<32x128xf32>, vector<1x128xf32> -> vector<1x128xf32>
    %c176 = arith.constant 176 : index
    %c0_29 = arith.constant 0 : index
    %67 = vector.load %arg4[%c176, %c0_29] : memref<456x128xf32, #tpu.memory_space<vmem>>, vector<1x128xf32>
    %68 = arith.addf %66, %67 : vector<1x128xf32>
    %cst_30 = arith.constant 0.000000e+00 : f32
    %69 = vector.broadcast %cst_30 : f32 to vector<1x128xf32>
    %70 = arith.cmpf ogt, %68, %69 : vector<1x128xf32>
    %cst_31 = arith.constant 0.000000e+00 : f32
    %71 = vector.broadcast %cst_31 : f32 to vector<1x128xf32>
    %72 = arith.minimumf %68, %71 : vector<1x128xf32>
    %73 = math.exp %72 : vector<1x128xf32>
    %cst_32 = arith.constant 1.000000e+00 : f32
    %74 = vector.broadcast %cst_32 : f32 to vector<1x128xf32>
    %75 = arith.subf %73, %74 : vector<1x128xf32>
    %76 = arith.select %70, %68, %75 : vector<1x128xi1>, vector<1x128xf32>
    %c184 = arith.constant 184 : index
    %c0_33 = arith.constant 0 : index
    %77 = vector.load %arg4[%c184, %c0_33] : memref<456x128xf32, #tpu.memory_space<vmem>>, vector<128x128xf32>
    %cst_34 = arith.constant dense<0.000000e+00> : vector<1x128xf32>
    %78 = tpu.matmul %76, %77, %cst_34 {dimension_numbers = #tpu.dot_dimension_numbers<[1], [0], [0], [1], [0, 0, 1, 1], [], []>} : vector<1x128xf32>, vector<128x128xf32>, vector<1x128xf32> -> vector<1x128xf32>
    %c312 = arith.constant 312 : index
    %c0_35 = arith.constant 0 : index
    %79 = vector.load %arg4[%c312, %c0_35] : memref<456x128xf32, #tpu.memory_space<vmem>>, vector<1x128xf32>
    %80 = arith.addf %78, %79 : vector<1x128xf32>
    %cst_36 = arith.constant 0.000000e+00 : f32
    %81 = vector.broadcast %cst_36 : f32 to vector<1x128xf32>
    %82 = arith.cmpf ogt, %80, %81 : vector<1x128xf32>
    %cst_37 = arith.constant 0.000000e+00 : f32
    %83 = vector.broadcast %cst_37 : f32 to vector<1x128xf32>
    %84 = arith.minimumf %80, %83 : vector<1x128xf32>
    %85 = math.exp %84 : vector<1x128xf32>
    %cst_38 = arith.constant 1.000000e+00 : f32
    %86 = vector.broadcast %cst_38 : f32 to vector<1x128xf32>
    %87 = arith.subf %85, %86 : vector<1x128xf32>
    %88 = arith.select %82, %80, %87 : vector<1x128xi1>, vector<1x128xf32>
    %c320 = arith.constant 320 : index
    %c0_39 = arith.constant 0 : index
    %89 = vector.load %arg4[%c320, %c0_39] : memref<456x128xf32, #tpu.memory_space<vmem>>, vector<128x128xf32>
    %cst_40 = arith.constant dense<0.000000e+00> : vector<1x128xf32>
    %90 = tpu.matmul %88, %89, %cst_40 {dimension_numbers = #tpu.dot_dimension_numbers<[1], [0], [0], [1], [0, 0, 1, 1], [], []>} : vector<1x128xf32>, vector<128x128xf32>, vector<1x128xf32> -> vector<1x128xf32>
    %c448 = arith.constant 448 : index
    %c0_41 = arith.constant 0 : index
    %91 = vector.load %arg4[%c448, %c0_41] : memref<456x128xf32, #tpu.memory_space<vmem>>, vector<1x128xf32>
    %92 = arith.addf %90, %91 : vector<1x128xf32>
    %c0_42 = arith.constant 0 : index
    %c0_43 = arith.constant 0 : index
    %c0_44 = arith.constant 0 : index
    %93 = vector.load %arg5[%c0_42, %c0_43, %c0_44] : memref<1x1x128xf32, #tpu.memory_space<vmem>>, vector<1x1x128xf32>
    %94 = vector.shape_cast %93 : vector<1x1x128xf32> to vector<1x128xf32>
    %95 = vector.shape_cast %92 : vector<1x128xf32> to vector<1x1x128xf32>
    tpu.vector_store %arg5[%c0_42, %c0_43, %c0_44], %95 {strides = array<i32>} : memref<1x1x128xf32, #tpu.memory_space<vmem>>, vector<1x1x128xf32>,
    %c0_45 = arith.constant 0 : index
    %c0_46 = arith.constant 0 : index
    %96 = vector.load %arg7[%c0_45, %c0_46] : memref<1x32xf32, #tpu.memory_space<vmem>>, vector<1x32xf32>
    tpu.vector_store %arg7[%c0_45, %c0_46], %39 {strides = array<i32>} : memref<1x32xf32, #tpu.memory_space<vmem>>, vector<1x32xf32>,
    %c0_47 = arith.constant 0 : index
    %c0_48 = arith.constant 0 : index
    %97 = vector.load %arg8[%c0_47, %c0_48] : memref<1x32xf32, #tpu.memory_space<vmem>>, vector<1x32xf32>
    tpu.vector_store %arg8[%c0_47, %c0_48], %64 {strides = array<i32>} : memref<1x32xf32, #tpu.memory_space<vmem>>, vector<1x32xf32>,
    %c0_49 = arith.constant 0 : index
    %c0_50 = arith.constant 0 : index
    %98 = vector.load %arg9[%c0_49, %c0_50] : memref<1x32xf32, #tpu.memory_space<vmem>>, vector<1x32xf32>
    tpu.vector_store %arg9[%c0_49, %c0_50], %36 {strides = array<i32>} : memref<1x32xf32, #tpu.memory_space<vmem>>, vector<1x32xf32>,
    %c0_51 = arith.constant 0 : index
    %c0_52 = arith.constant 0 : index
    %99 = vector.load %arg10[%c0_51, %c0_52] : memref<1x32xf32, #tpu.memory_space<vmem>>, vector<1x32xf32>
    tpu.vector_store %arg10[%c0_51, %c0_52], %61 {strides = array<i32>} : memref<1x32xf32, #tpu.memory_space<vmem>>, vector<1x32xf32>,
    %c7_i32 = arith.constant 7 : i32
    %100 = arith.cmpi eq, %arg0, %c7_i32 : i32
    %101 = arith.extui %100 : i1 to i32
    %c0_i32_53 = arith.constant 0 : i32
    %102 = arith.cmpi ne, %101, %c0_i32_53 : i32
    scf.if %102 {
      %c0_54 = arith.constant 0 : index
      %c0_55 = arith.constant 0 : index
      %c0_56 = arith.constant 0 : index
      %103 = vector.load %arg6[%c0_54, %c0_55, %c0_56] : memref<4x1x32xf32, #tpu.memory_space<vmem>>, vector<1x1x32xf32>
      %104 = vector.shape_cast %103 : vector<1x1x32xf32> to vector<1x32xf32>
      %105 = vector.shape_cast %39 : vector<1x32xf32> to vector<1x1x32xf32>
      tpu.vector_store %arg6[%c0_54, %c0_55, %c0_56], %105 {strides = array<i32>} : memref<4x1x32xf32, #tpu.memory_space<vmem>>, vector<1x1x32xf32>,
      %c1 = arith.constant 1 : index
      %c0_57 = arith.constant 0 : index
      %c0_58 = arith.constant 0 : index
      %106 = vector.load %arg6[%c1, %c0_57, %c0_58] : memref<4x1x32xf32, #tpu.memory_space<vmem>>, vector<1x1x32xf32>
      %107 = vector.shape_cast %106 : vector<1x1x32xf32> to vector<1x32xf32>
      %108 = vector.shape_cast %64 : vector<1x32xf32> to vector<1x1x32xf32>
      tpu.vector_store %arg6[%c1, %c0_57, %c0_58], %108 {strides = array<i32>} : memref<4x1x32xf32, #tpu.memory_space<vmem>>, vector<1x1x32xf32>,
      %c2 = arith.constant 2 : index
      %c0_59 = arith.constant 0 : index
      %c0_60 = arith.constant 0 : index
      %109 = vector.load %arg6[%c2, %c0_59, %c0_60] : memref<4x1x32xf32, #tpu.memory_space<vmem>>, vector<1x1x32xf32>
      %110 = vector.shape_cast %109 : vector<1x1x32xf32> to vector<1x32xf32>
      %111 = vector.shape_cast %36 : vector<1x32xf32> to vector<1x1x32xf32>
      tpu.vector_store %arg6[%c2, %c0_59, %c0_60], %111 {strides = array<i32>} : memref<4x1x32xf32, #tpu.memory_space<vmem>>, vector<1x1x32xf32>,
      %c3 = arith.constant 3 : index
      %c0_61 = arith.constant 0 : index
      %c0_62 = arith.constant 0 : index
      %112 = vector.load %arg6[%c3, %c0_61, %c0_62] : memref<4x1x32xf32, #tpu.memory_space<vmem>>, vector<1x1x32xf32>
      %113 = vector.shape_cast %112 : vector<1x1x32xf32> to vector<1x32xf32>
      %114 = vector.shape_cast %61 : vector<1x32xf32> to vector<1x1x32xf32>
      tpu.vector_store %arg6[%c3, %c0_61, %c0_62], %114 {strides = array<i32>} : memref<4x1x32xf32, #tpu.memory_space<vmem>>, vector<1x1x32xf32>,
    } else {
    }
    return
  }
  func.func @transform_0(%arg0: i32) -> (i32, i32, i32) {
    %c0_i32 = arith.constant 0 : i32
    %c0_i32_0 = arith.constant 0 : i32
    %c0_i32_1 = arith.constant 0 : i32
    return %arg0, %c0_i32, %c0_i32_0 : i32, i32, i32
  }
  func.func @transform_1(%arg0: i32) -> (i32, i32, i32) {
    %c0_i32 = arith.constant 0 : i32
    %c0_i32_0 = arith.constant 0 : i32
    %c0_i32_1 = arith.constant 0 : i32
    %c0_i32_2 = arith.constant 0 : i32
    return %c0_i32, %c0_i32_0, %c0_i32_1 : i32, i32, i32
  }
  func.func @transform_2(%arg0: i32) -> (i32, i32, i32) {
    %c0_i32 = arith.constant 0 : i32
    %c0_i32_0 = arith.constant 0 : i32
    %c0_i32_1 = arith.constant 0 : i32
    %c0_i32_2 = arith.constant 0 : i32
    return %c0_i32, %c0_i32_0, %c0_i32_1 : i32, i32, i32
  }
  func.func @transform_3(%arg0: i32) -> (i32, i32) {
    %c0_i32 = arith.constant 0 : i32
    %c0_i32_0 = arith.constant 0 : i32
    %c0_i32_1 = arith.constant 0 : i32
    return %c0_i32, %c0_i32_0 : i32, i32
  }
  func.func @transform_4(%arg0: i32) -> (i32, i32, i32) {
    %c0_i32 = arith.constant 0 : i32
    %c0_i32_0 = arith.constant 0 : i32
    %c0_i32_1 = arith.constant 0 : i32
    return %arg0, %c0_i32, %c0_i32_0 : i32, i32, i32
  }
  func.func @transform_5(%arg0: i32) -> (i32, i32, i32) {
    %c0_i32 = arith.constant 0 : i32
    %c0_i32_0 = arith.constant 0 : i32
    %c0_i32_1 = arith.constant 0 : i32
    %c0_i32_2 = arith.constant 0 : i32
    return %c0_i32, %c0_i32_0, %c0_i32_1 : i32, i32, i32
  }
}

</mosaic_0001>

<bundles_post_ra>
// kernel: policy_rollout.1
= control target key start
LH: loop header
LB: loop body
LE: loop exit
PB: predicated region body
PF: predicated region fallthrough
CT: control target
= control target key end

     0   :  { %11 = vsyncpa [#allocation7], 0  ;;  %s1885_s0 = inlined_call_operand.hbm [shape: f32[8,1,32], index: 0, kind: input, shape index: {}]   ;;  %s1886_s1 = inlined_call_operand.vmem [shape: f32[2,1,32], index: 1, kind: input, shape index: {}]   ;;  %s1887_s2 = inlined_call_operand.vmem [shape: f32[2,1,32], index: 2, kind: input, shape index: {}]   ;;  %s1888_s3 = inlined_call_operand.hbm [shape: f32[456,128], index: 3, kind: input, shape index: {}]   ;;  %s1889_s4 = inlined_call_operand.hbm [shape: f32[8,1,128], index: 4, kind: output, shape index: {0}]   ;;  %s1890_s5 = inlined_call_operand.vmem [shape: f32[4,1,32], index: 5, kind: output, shape index: {1}]  }
   0x1   :  { %13 = vsyncpa [#allocation7 + $0x1], 0 }
   0x2   :  { %14 = vsyncpa [#allocation10], 0 }
   0x3   :  { %15 = vsyncpa [#allocation8], 0 }
   0x4   :  { %17 = vsyncpa [#allocation8 + $0x1], 0  ;;  %s1572_s18 = smov 0   ;;  %s1574_s19 = smov 0  }
   0x5   :  { %s1576_s20 = smov 0   ;;  %s1578_s21 = smov 0  }
   0x6 LB: > { %s1593_s22 = sadd.s32 4294967295, %s1529_s21   ;;  %s1036_s23 = sadd.s32 4294967294, %s1529_s21   ;;  %s1529_s21 = sphi %s1578_s21, %s1912_s21   ;;  %s1525_s20 = sphi %s1576_s20, %s1911_s20   ;;  %s1521_s19 = sphi %s1574_s19, %s1910_s19   ;;  %s1517_s18 = sphi %s1572_s18, %s1909_s18  }
   0x7   : > { %p43_p0 = scmp.ne.s32.totalorder %s1521_s19, %s1517_s18  ;;  %p1891_p1 = scmp.eq.s32.totalorder %s1593_s22, 0 }
   0x8   : > { %p136_p3 = scmp.eq.s32.totalorder %s1036_s23, 7  ;;  %p1037_p5 = scmp.ge.s32.totalorder %s1529_s21, 1 }
   0x9   : > { %p1602_p4 = por %p1891_p1, %p43_p0  ;;  %p164_p7 = scmp.lt.s32.totalorder %s1529_s21, 9 }
   0xa   : > { %p1607_p6 = por %p136_p3, %p43_p0  ;;  %s1531_s27 = smov [#allocation9]  }
   0xb   : > { %s1894_s24 = scalar_select %p1602_p4, 1, 0 }
   0xc   : > { %s1895_s25 = scalar_select %p1607_p6, 1, 0 }
   0xd   : > { %p1613_p9 = pnand %p1037_p5, %p164_p7  ;;  %s182_s28 = sshll.u32 %s1531_s27, 4  ;;  %s183_s28 = int_to_ptr.vmem [resolvable:$true] %s182_s28 }
   0xe   : > { %s1626_s30 = sadd.s32 1, %s1529_s21   ;;  %s30_s6 = sadd.s32 1, %s1525_s20 }
   0xf   : > { %s1896_s26 = scalar_select %p1613_p9, 1, 0 }
  0x10   : > { %p1332_p10 = pneg %p1613_p9  ;;  %s27_s7 = ssub.s32 %s1529_s21, %s1626_s30 }
  0x11   : > { %s1401_s10 = scalar_lea.hbm %s1888_s3, 7296 }
  0x12   : > { %p1621_p11 = pnand %p1332_p10, %p1891_p1  ;;  %p1402_p12 = scmp.ne.s32.totalorder %s1888_s3, %s1401_s10 }
  0x13   : > { %p1408_p5 = scmp.lt.u32.totalorder %s1401_s10, %s1888_s3 }
  0x14   : > { %p1403_p13 = pneg %p1621_p11 }
  0x16   : > { %p1404_p0 = pnand %p1403_p13, %p1402_p12 }
  0x18   : > { %p1405_p3 = pneg %p1404_p0 }
  0x1a   : > { %p1410_p7 = pnand %p1408_p5, %p1405_p3 }
  0x1c   : > { %1413 = shalt.err (!%p1410_p7)
}
  0x1d   : > { %s1414_s15 = scalar_lea.vmem %s183_s28, 7296  ;;  %p1422_p2 = scmp.lt.s32.totalorder %s183_s28, %s183_s28 }
  0x1e   : > { %p1415_p10 = scmp.ne.s32.totalorder %s183_s28, %s1414_s15  ;;  %p1423_p6 = scmp.lt.s32.totalorder %s1414_s15, %s1414_s15 }
  0x20   : > { %p1417_p8 = pnand %p1415_p10, %p1403_p13  ;;  %p1424_p4 = por %p1423_p6, %p1422_p2 }
  0x22   : > { %p1418_p1 = pneg %p1417_p8 }
  0x24   : > { %p1425_p9 = pnand %p1424_p4, %p1418_p1 }
  0x26   : > { %1428 = shalt.err (!%p1425_p9)
}
  0x27   : > { %s1532_s16 = smov 128   ;;  %s1533_s17 = smov 8  }
  0x28   : > { %1335 = dma.hbm_to_vmem [thread:$0]  (!%p1621_p11), %s1888_s3, 7296, %s183_s28, [#allocation10], %s1532_s16, %s1532_s16, %s1533_s17  }
  0x29   : > { %p28_p8 = scmp.eq.s32.totalorder %s27_s7, 0  ;;  %p37_p2 = scmp.ne.s32.totalorder %s1525_s20, %s1521_s19 }
  0x2a   : > { %p38_p1 = scmp.eq.s32.totalorder %s1529_s21, 0  ;;  %p1345_p4 = scmp.lt.s32.totalorder %s1529_s21, 8 }
  0x2b   : > { %s1652_s8 = scalar_select %p28_p8, %s1525_s20, %s30_s6  }
  0x2c   : > { %p39_p6 = por %p38_p1, %p37_p2  ;;  %p1898_p9 = scmp.eq.s32.totalorder %s1593_s22, 7 }
  0x2d   : > { %s196_s10 = sand.u32 1, %s1525_s20   ;;  %s1040_s11 = sshll.u32 %s1529_s21, 4 }
  0x2e   : > { %p1656_p12 = por %p1898_p9, %p37_p2  ;;  %s1665_s13 = scalar_lea.hbm %s1885_s0, %s1040_s11 }
  0x2f   : > { %s199_s28 = scalar_lea.vmem [#allocation6], %s196_s10  ;;  %p1669_p11 = pnand %p1345_p4, %p39_p6 }
  0x30   : > { %s206_s6 = sshll.u32 %s199_s28, 4  ;;  %s197_s14 = scalar_lea.sflag [#allocation7], %s196_s10  ;;  %s1667_s6 = int_to_ptr.vmem [resolvable:$true] %s206_s6 }
  0x31   : > { %s1429_s15 = scalar_lea.hbm %s1665_s13, 16  ;;  %p1431_p0 = pneg %p1669_p11 }
  0x32   : > { %p1430_p13 = scmp.ne.s32.totalorder %s1665_s13, %s1429_s15  ;;  %s1434_s23 = scalar_lea.hbm %s1885_s0, 128 }
  0x33   : > { %p1435_p7 = scmp.lt.u32.totalorder %s1665_s13, %s1885_s0  ;;  %p1436_p10 = scmp.lt.u32.totalorder %s1434_s23, %s1429_s15 }
  0x34   : > { %p1432_p3 = pnand %p1431_p0, %p1430_p13  ;;  %p1438_p2 = scmp.lt.u32.totalorder %s1429_s15, %s1665_s13 }
  0x35   : > { %p1437_p8 = por %p1436_p10, %p1435_p7 }
  0x36   : > { %p1433_p5 = pneg %p1432_p3 }
  0x37   : > { %p1439_p1 = por %p1438_p2, %p1437_p8 }
  0x39   : > { %p1440_p4 = pnand %p1439_p1, %p1433_p5 }
  0x3b   : > { %1443 = shalt.err (!%p1440_p4)
}
  0x3c   : > { %s1444_s10 = scalar_lea.vmem %s1667_s6, 16  ;;  %s1534_s12 = smov [#allocation6]  }
  0x3d   : > { %p1445_p6 = scmp.ne.s32.totalorder %s1667_s6, %s1444_s10  ;;  %s1449_s29 = sshll.u32 %s1534_s12, 4  ;;  %s1450_s29 = int_to_ptr.vmem [resolvable:$false] %s1449_s29 }
  0x3e   : > { %s1451_s28 = scalar_lea.vmem %s1450_s29, 32  ;;  %p1452_p3 = scmp.lt.s32.totalorder %s1667_s6, %s1450_s29 }
  0x3f   : > { %p1447_p9 = pnand %p1445_p6, %p1431_p0  ;;  %p1453_p7 = scmp.lt.s32.totalorder %s1451_s28, %s1444_s10 }
  0x41   : > { %p1448_p13 = pneg %p1447_p9  ;;  %p1454_p10 = por %p1453_p7, %p1452_p3 }
  0x43   : > { %p1455_p8 = pnand %p1454_p10, %p1448_p13 }
  0x45   : > { %1458 = shalt.err (!%p1455_p8)
}
  0x46   : > { %1339 = dma.hbm_to_vmem [thread:$0]  (!%p1669_p11), %s1665_s13, 16, %s1667_s6, %s197_s14  }
  0x47   : > { %p1901_p5 = scmp.ne.s32.totalorder %s1896_s26, 0 }
  0x48   : > { %s1701_s15 = sand.u32 (!%p1901_p5), 1, %s1521_s19   ;;  %p1902_p0 = scmp.ne.s32.totalorder (!%p1901_p5), %s1894_s24, 0 }
  0x49   : > { %215 = sbr.rel (%p1901_p5) target bundleno = 2231 (0x8b7), region = 36  ;;  %s218_s16 = scalar_lea.sflag (!%p1901_p5), [#allocation7], %s1701_s15 }
  0x4a   : > { %s220_s17 = scalar_lea.vmem (!%p1901_p5), [#allocation6], %s1701_s15 }
  0x50   : > { %1504 = dma.done.wait (%p1902_p0), %s218_s16, 16  }
  0x51   : > { %1506 = vsyncadd (%p1902_p0), %s218_s16, 4294967280  ;;  %p1903_p2 = scmp.eq.s32.totalorder %s1593_s22, 0 }
  0x53   : > { %1508 = dma.done.wait (%p1903_p2), [#allocation10], 7296   ;;  %p1904_p11 = pmov %p1903_p2 }
  0x54   : > { %s246_s26 = scalar_lea.vmem [#allocation11], %s1701_s15  ;;  %p1905_p1 = scmp.ne.s32.totalorder %s1593_s22, 0 }
  0x55   : > { %1510 = vsyncadd (%p1904_p11), [#allocation10], 4294960000  ;;  %v253_v0 = vld [vmem:[%s1886_s1] sm:$0x1] (!%p1905_p1)  ;;  %vm254_vm0 = vcmask (!%p1905_p1), 253952  }
  0x56   : > { %252 = sbr.rel (%p1905_p1) target bundleno = 93 (0x5d), region = 48  ;;  %v1044_v1 = vld [vmem:[%s1886_s1 + $0x1] sm:$0x1] (!%p1905_p1)  ;;  %255 = vst.msk [vmem:[#allocation2] sm:$0x1] (!%p1905_p1), %vm254_vm0, %v253_v0 }
  0x57   : > { %258 = vst.msk [vmem:[#allocation3] sm:$0x1] (!%p1905_p1), %vm254_vm0, %v1044_v1  ;;  %v259_v2 = vld [vmem:[%s1887_s2] sm:$0x1] (!%p1905_p1)  ;;  %v1045_v3 = vld [vmem:[%s1887_s2 + $0x1] sm:$0x1] (!%p1905_p1) }
  0x58   : > { %260 = vst.msk [vmem:[#allocation4] sm:$0x1] (!%p1905_p1), %vm254_vm0, %v259_v2  ;;  %263 = vst.msk [vmem:[#allocation5] sm:$0x1] (!%p1905_p1), %vm254_vm0, %v1045_v3 }
  0x5d PF: > { %v278_v4 = vld [vmem:[#allocation9 + $0x20] sm:$0xff]  ;;  %v279_v5 = vld [vmem:[#allocation9 + $0x28] sm:$0xff]  ;;  %v1535_v7 = vmov 0.0|0.0   ;;  %v280_v10 = vld [vmem:[#allocation9 + $0x30] sm:$0xff]  ;;  %vm1536_vm1 = vmmov 0   ;;  %v1537_v15 = vmov 0.0   ;;  %v264_v20 = vlaneseq }
  0x5e   : > { %v274_v6 = vld [vmem:[#allocation9] sm:$0xff]  ;;  %1246 = vmatprep.subr.bf16.mxu0 %v1535_v7  ;;  %1252 = vmatprep.subr.bf16.mxu1 %v1535_v7  ;;  %v1247_v8 = vpack.c.bf16 %v279_v5, %v278_v4  ;;  %v275_v9 = vld [vmem:[#allocation9 + $0x8] sm:$0xff]  ;;  %v281_v11 = vld [vmem:[#allocation9 + $0x38] sm:$0xff]  ;;  %vm282_vm2 = vcmask 261120   ;;  %s1538_s10 = smov 64   ;;  %s1539_s12 = smov 32  }
  0x5f   : > { %v1253_v12 = vpack.c.bf16 %v275_v9, %v274_v6  ;;  %v276_v13 = vld [vmem:[#allocation9 + $0x10] sm:$0xff]  ;;  %v277_v14 = vld [vmem:[#allocation9 + $0x18] sm:$0xff]  ;;  %1129 = vmatprep.mubr.msk.f32.mxu0 %vm1536_vm1, %v1537_v15  ;;  %1140 = vmatprep.mubr.msk.f32.mxu1 %vm1536_vm1, %v1537_v15  ;;  %v1250_v16 = vpack.c.bf16 %v281_v11, %v280_v10  ;;  %v265_v21 = vand.u32 127, %v264_v20  ;;  %v429_v24 = vld [vmem:[#allocation9 + $0x80] sm:$0x1]  ;;  %vm919_vm6 = vcmask 253952  }
  0x60   : > { %1248 = vmatpush3.bf16.msra.mxu0 %v1247_v8  ;;  %v1256_v17 = vpack.c.bf16 %v277_v14, %v276_v13  ;;  %v270_v18 = vld [vmem:[#allocation2] sm:$0x1]  ;;  %v1048_v36 = vld [vmem:[#allocation4] ss:$0 sm:$0xff]  ;;  %v466_v43 = vld [vmem:[#allocation9 + $0x60] sm:$0xff]  ;;  %s1540_s29 = smov 96  }
  0x61   : > { %1254 = vmatpush3.bf16.msra.mxu1 %v1253_v12  ;;  %1249 = vmatprep.subr.bf16.mxu0 %v1535_v7  ;;  %v269_v19 = vld [vmem:[%s220_s17] sm:$0x1]  ;;  %vm266_vm3 = vcmp.ge.s32.totalorder %v265_v21, 64  ;;  %vm267_vm4 = vcmp.lt.s32.totalorder %v265_v21, 96  ;;  %v467_v44 = vld [vmem:[#allocation9 + $0x68] sm:$0xff]  ;;  %v462_v45 = vld [vmem:[#allocation9 + $0x40] sm:$0xff] }
  0x62   : > { %1255 = vmatprep.subr.bf16.mxu1 %v1535_v7  ;;  %vm1746_vm5 = vmand %vm266_vm3, %vm267_vm4  ;;  %v1259_v46 = vpack.c.bf16 %v467_v44, %v466_v43  ;;  %v463_v47 = vld [vmem:[#allocation9 + $0x48] sm:$0xff]  ;;  %v468_v48 = vld [vmem:[#allocation9 + $0x70] sm:$0xff]  ;;  %p1055_p4 = scmp.ne.s32.totalorder %s1593_s22, 7 }
  0x63   : > { %v469_v49 = vld [vmem:[#allocation9 + $0x78] sm:$0xff]  ;;  %v1265_v50 = vpack.c.bf16 %v463_v47, %v462_v45  ;;  %v464_v51 = vld [vmem:[#allocation9 + $0x50] sm:$0xff]  ;;  %v618_v0 = vld [vmem:[#allocation9 + $0x88] sm:$0x1] }
  0x64   : > { %1251 = vmatpush3.bf16.msra.mxu0 %v1250_v16  ;;  %v465_v52 = vld [vmem:[#allocation9 + $0x58] sm:$0xff]  ;;  %v1262_v53 = vpack.c.bf16 %v469_v49, %v468_v48  ;;  %v653_v20 = vld [vmem:[#allocation9 + $0xa0] sm:$0xff]  ;;  %v740_v29 = vld [vmem:[#allocation9 + $0xd0] sm:$0xff] }
  0x65   : > { %1257 = vmatpush3.bf16.msra.mxu1 %v1256_v17  ;;  %1258 = vmatprep.subr.bf16.mxu0 %v1535_v7  ;;  %v1268_v54 = vpack.c.bf16 %v465_v52, %v464_v51  ;;  %v271_v55 = vld [vmem:[#allocation3] sm:$0x1]  ;;  %v1051_v59 = vld [vmem:[#allocation5] ss:$0 sm:$0xff]  ;;  %v746_v43 = vld [vmem:[#allocation9 + $0x100] sm:$0xff] }
  0x66   : > { %1264 = vmatprep.subr.bf16.mxu1 %v1535_v7  ;;  %v747_v45 = vld [vmem:[#allocation9 + $0x108] sm:$0xff]  ;;  %v750_v48 = vld [vmem:[#allocation9 + $0x120] sm:$0xff]  ;;  %v752_v51 = vld [vmem:[#allocation9 + $0x130] sm:$0xff] }
  0x67   : > { %1130 = vmatmul.mubr.msk.f32.vlgmr.msra.gmra.mrb[0].mxu0 %vm282_vm2, %v270_v18  ;;  %v651_v18 = vld [vmem:[#allocation9 + $0x90] sm:$0xff] }
  0x68   : > { %1141 = vmatmul.mubr.msk.f32.vlgmr.msra.gmra.mrb[0].mxu1 %vm282_vm2, %v269_v19  ;;  %1151 = vmatprep.mubr.msk.f32.mxu0 %vm1536_vm1, %v1537_v15  ;;  %v652_v19 = vld [vmem:[#allocation9 + $0x98] sm:$0xff] }
  0x69   : > { %1162 = vmatprep.mubr.msk.f32.mxu1 %vm1536_vm1, %v1537_v15  ;;  %1260 = vmatpush3.bf16.msra.mxu0 %v1259_v46  ;;  %v1271_v21 = vpack.c.bf16 %v652_v19, %v651_v18  ;;  %v748_v46 = vld [vmem:[#allocation9 + $0x110] sm:$0xff]  ;;  %v842_v18 = vld [vmem:[#allocation9 + $0x1a0] sm:$0xff] }
  0x6a   : > { %1266 = vmatpush3.bf16.msra.mxu1 %v1265_v50  ;;  %1261 = vmatprep.subr.bf16.mxu0 %v1535_v7  ;;  %v1292_v47 = vpack.c.bf16 %v748_v46, %v747_v45  ;;  %v751_v50 = vld [vmem:[#allocation9 + $0x128] sm:$0xff] }
  0x6b   : > { %1267 = vmatprep.subr.bf16.mxu1 %v1535_v7  ;;  %v1298_v52 = vpack.c.bf16 %v752_v51, %v751_v50 }
  0x6d   : > { %1263 = vmatpush3.bf16.msra.mxu0 %v1262_v53  ;;  %v830_v53 = vld [vmem:[#allocation9 + $0x140] sm:$0xff] }
  0x6e   : > { %1269 = vmatpush3.bf16.msra.mxu1 %v1268_v54  ;;  %1270 = vmatprep.subr.bf16.mxu0 %v1535_v7  ;;  %v831_v54 = vld [vmem:[#allocation9 + $0x148] sm:$0xff] }
  0x6f   : > { %1276 = vmatprep.subr.bf16.mxu1 %v1535_v7 }
  0x70   : > { %1152 = vmatmul.mubr.msk.f32.vlgmr.msra.gmra.mrb[2].mxu0 %vm282_vm2, %v271_v55  ;;  %v832_v55 = vld [vmem:[#allocation9 + $0x150] sm:$0xff] }
  0x71   : > { %1173 = vmatprep.mubr.msk.f32.mxu0 %vm1536_vm1, %v1537_v15  ;;  %1272 = vmatpush3.bf16.msra.mxu0 %v1271_v21 }
  0x72   : > { %1273 = vmatprep.subr.bf16.mxu0 %v1535_v7 }
 0x13a   : > { %v352_v22 = vpop.f32.mrb[0].mxu0 }
 0x13b   : > { %v425_v23 = vpop.f32.mrb[0].mxu1  ;;  %v1131_v25 = vpop.f32.mrb[1].mxu0 }
 0x13c   : > { %v426_v26 = vadd.f32 %v425_v23, %v352_v22  ;;  %v1142_v27 = vpop.f32.mrb[1].mxu1  ;;  %v654_v22 = vld [vmem:[#allocation9 + $0xa8] sm:$0xff]  ;;  %v737_v25 = vld [vmem:[#allocation9 + $0xb8] sm:$0xff] }
 0x13d   : > { %v1274_v23 = vpack.c.bf16 %v654_v22, %v653_v20  ;;  %v739_v27 = vld [vmem:[#allocation9 + $0xc8] sm:$0xff]  ;;  %v844_v22 = vld [vmem:[#allocation9 + $0x1b0] sm:$0xff] }
 0x13e   : > { %v430_v28 = vadd.f32 %v429_v24, %v426_v26  ;;  %v738_v26 = vld [vmem:[#allocation9 + $0xc0] sm:$0xff]  ;;  %v843_v20 = vld [vmem:[#allocation9 + $0x1a8] sm:$0xff] }
 0x13f   : > { %1275 = vmatpush3.bf16.msra.mxu0 %v1274_v23  ;;  %v1319_v21 = vpack.c.bf16 %v843_v20, %v842_v18  ;;  %v845_v23 = vld [vmem:[#allocation9 + $0x1b8] sm:$0xff] }
 0x140   : > { %v431_v30 = vmul.f32 0.5, %v430_v28  ;;  %1300 = vmatprep.subr.bf16.mxu0 %v1535_v7 }
 0x142   : > { %v432_v31 = vsel %vm1746_vm5, %v430_v28, %v431_v30  ;;  %v1277_v28 = vpack.c.bf16 %v738_v26, %v737_v25  ;;  %v1280_v30 = vpack.c.bf16 %v740_v29, %v739_v27  ;;  %v753_v25 = vld [vmem:[#allocation9 + $0x138] sm:$0x1] }
 0x143   : > { %1389 = vtanh.f32 %v432_v31  ;;  %v539_v60 = vpop.f32.mrb[2].mxu0  ;;  %v741_v31 = vld [vmem:[#allocation9 + $0xd8] sm:$0xff] }
 0x144   : > { %v1153_v61 = vpop.f32.mrb[3].mxu0 }
 0x14d   : > { %v1390_v32 = vpop.eup %1389 }
 0x14e   : > { %v434_v33 = vadd.f32 1.0, %v1390_v32 }
 0x150   : > { %v435_v34 = vmul.f32 0.5, %v434_v33 }
 0x152   : > { %v436_v35 = vsel %vm1746_vm5, %v1390_v32, %v435_v34  ;;  %v742_v32 = vld [vmem:[#allocation9 + $0xe0] sm:$0xff] }
 0x153   : > { %447 = vrot.lane.b32.xlu0 %v436_v35, %s1538_s10 }
 0x157   : > { %442 = vrot.lane.b32.xlu0 %v1048_v36, %s1539_s12 }
 0x1c5   : > { %v448_v37 = vpop.permute.xlu0 %447 }
 0x1c6   : > { %v450_v38 = vmul.f32 %v448_v37, %v436_v35 }
 0x1c8   : > { %452 = vrot.lane.b32.xlu1 %v450_v38, %s1539_s12 }
 0x1c9   : > { %v443_v39 = vpop.permute.xlu0 %442 }
 0x1ca   : > { %v445_v40 = vmul.f32 %v443_v39, %v436_v35  ;;  %v743_v39 = vld [vmem:[#allocation9 + $0xe8] sm:$0xff] }
 0x23a   : > { %v453_v41 = vpop.permute.xlu1 %452 }
 0x23b   : > { %v1757_v42 = vadd.f32 %v453_v41, %v445_v40  ;;  %v744_v40 = vld [vmem:[#allocation9 + $0xf0] sm:$0xff] }
 0x23c   : > { %v1286_v41 = vpack.c.bf16 %v744_v40, %v743_v39 }
 0x23d   : > { %1391 = vtanh.f32 %v1757_v42 }
 0x247   : > { %v1392_v56 = vpop.eup %1391 }
 0x248   : > { %458 = vrot.lane.b32.xlu1 %v1392_v56, %s1538_s10  ;;  %v1301_v56 = vpack.c.bf16 %v831_v54, %v830_v53 }
 0x2ba   : > { %v459_v57 = vpop.permute.xlu1 %458 }
 0x2bb   : > { %v461_v58 = vmul.f32 %v459_v57, %v436_v35  ;;  %v1283_v35 = vpack.c.bf16 %v742_v32, %v741_v31  ;;  %v833_v57 = vld [vmem:[#allocation9 + $0x158] sm:$0xff] }
 0x2bd   : > { %544 = vrot.lane.b32.xlu0 %v461_v58, %s1539_s12  ;;  %v1304_v58 = vpack.c.bf16 %v833_v57, %v832_v55 }
 0x2c1   : > { %631 = vrot.lane.b32.xlu0 %v1051_v59, %s1539_s12  ;;  %v834_v59 = vld [vmem:[#allocation9 + $0x160] sm:$0xff] }
 0x32f   : > { %v1770_v62 = vpop.permute.xlu0 %544 }
 0x330   : > { %920 = vst.msk [vmem:[#allocation2] sm:$0x1] %vm919_vm6, %v1770_v62  ;;  %1163 = vmatmul.mubr.msk.f32.vlgmr.msra.gmra.mrb[2].mxu1 %vm282_vm2, %v1770_v62  ;;  %937 = vst.msk [vmem:[%s1890_s5] sm:$0x1] (!%p1055_p4), %vm919_vm6, %v1770_v62 }
 0x331   : > { %1208 = vmatprep.mubr.msk.f32.mxu1 %vm1536_vm1, %v1537_v15  ;;  %1278 = vmatpush3.bf16.msra.mxu1 %v1277_v28 }
 0x332   : > { %1279 = vmatprep.subr.bf16.mxu1 %v1535_v7 }
 0x333   : > { %v632_v13 = vpop.permute.xlu0 %631 }
 0x335   : > { %1281 = vmatpush3.bf16.msra.mxu1 %v1280_v30 }
 0x336   : > { %1282 = vmatprep.subr.bf16.mxu1 %v1535_v7 }
 0x339   : > { %1284 = vmatpush3.bf16.msra.mxu1 %v1283_v35 }
 0x33a   : > { %1285 = vmatprep.subr.bf16.mxu1 %v1535_v7 }
 0x33d   : > { %1287 = vmatpush3.bf16.msra.mxu1 %v1286_v41 }
 0x33e   : > { %1288 = vmatprep.subr.bf16.mxu1 %v1535_v7 }
 0x403   : > { %v614_v63 = vpop.f32.mrb[2].mxu1 }
 0x404   : > { %v615_v1 = vadd.f32 %v614_v63, %v539_v60  ;;  %v1164_v2 = vpop.f32.mrb[3].mxu1  ;;  %v835_v60 = vld [vmem:[#allocation9 + $0x168] sm:$0xff]  ;;  %v655_v63 = vld [vmem:[#allocation9 + $0xb0] sm:$0x1] }
 0x405   : > { %v1307_v61 = vpack.c.bf16 %v835_v60, %v834_v59 }
 0x406   : > { %v619_v3 = vadd.f32 %v618_v0, %v615_v1 }
 0x408   : > { %v620_v4 = vmul.f32 0.5, %v619_v3 }
 0x40a   : > { %v621_v5 = vsel %vm1746_vm5, %v619_v3, %v620_v4 }
 0x40b   : > { %1393 = vtanh.f32 %v621_v5 }
 0x415   : > { %v1394_v6 = vpop.eup %1393 }
 0x416   : > { %v623_v8 = vadd.f32 1.0, %v1394_v6 }
 0x418   : > { %v624_v9 = vmul.f32 0.5, %v623_v8 }
 0x41a   : > { %v625_v10 = vsel %vm1746_vm5, %v1394_v6, %v624_v9  ;;  %v836_v9 = vld [vmem:[#allocation9 + $0x170] sm:$0xff] }
 0x41b   : > { %636 = vrot.lane.b32.xlu1 %v625_v10, %s1538_s10  ;;  %v634_v14 = vmul.f32 %v632_v13, %v625_v10  ;;  %v839_v13 = vld [vmem:[#allocation9 + $0x188] sm:$0xff] }
 0x48d   : > { %v637_v11 = vpop.permute.xlu1 %636 }
 0x48e   : > { %v639_v12 = vmul.f32 %v637_v11, %v625_v10 }
 0x490   : > { %641 = vrot.lane.b32.xlu1 %v639_v12, %s1539_s12  ;;  %v838_v12 = vld [vmem:[#allocation9 + $0x180] sm:$0xff] }
 0x502   : > { %v642_v16 = vpop.permute.xlu1 %641 }
 0x503   : > { %v644_v17 = vadd.f32 %v642_v16, %v634_v14  ;;  %v1313_v14 = vpack.c.bf16 %v839_v13, %v838_v12  ;;  %v840_v16 = vld [vmem:[#allocation9 + $0x190] sm:$0xff] }
 0x505   : > { %1395 = vtanh.f32 %v644_v17 }
 0x50f   : > { %v1396_v24 = vpop.eup %1395 }
 0x510   : > { %647 = vrot.lane.b32.xlu0 %v1396_v24, %s1538_s10  ;;  %v1322_v24 = vpack.c.bf16 %v845_v23, %v844_v22 }
 0x514   : > { %924 = vrot.lane.b32.xlu0 %v1757_v42, %s1540_s29  ;;  %v745_v42 = vld [vmem:[#allocation9 + $0xf8] sm:$0xff] }
 0x515   : > { %v1289_v44 = vpack.c.bf16 %v746_v43, %v745_v42 }
 0x517   : > { %1290 = vmatpush3.bf16.msra.mxu1 %v1289_v44 }
 0x518   : > { %1291 = vmatprep.subr.bf16.mxu1 %v1535_v7 }
 0x51b   : > { %1293 = vmatpush3.bf16.msra.mxu1 %v1292_v47 }
 0x51c   : > { %1294 = vmatprep.subr.bf16.mxu1 %v1535_v7 }
 0x582   : > { %v648_v33 = vpop.permute.xlu0 %647 }
 0x583   : > { %v650_v34 = vmul.f32 %v648_v33, %v625_v10  ;;  %v837_v10 = vld [vmem:[#allocation9 + $0x178] sm:$0xff] }
 0x584   : > { %v1310_v11 = vpack.c.bf16 %v837_v10, %v836_v9 }
 0x585   : > { %657 = vrot.lane.b32.xlu1 %v650_v34, %s1539_s12  ;;  %v846_v34 = vld [vmem:[#allocation9 + $0x1c0] sm:$0x1] }
 0x586   : > { %v1791_v36 = vpop.permute.xlu0 %924 }
 0x587   : > { %927 = vst.msk [vmem:[#allocation4] sm:$0x1] %vm919_vm6, %v1791_v36  ;;  %1057 = vst.msk [vmem:[%s1890_s5 + $0x2] sm:$0x1] (!%p1055_p4), %vm919_vm6, %v1791_v36 }
 0x589   : > { %929 = vrot.lane.b32.xlu1 %v644_v17, %s1540_s29  ;;  %v841_v17 = vld [vmem:[#allocation9 + $0x198] sm:$0xff] }
 0x58a   : > { %v1316_v19 = vpack.c.bf16 %v841_v17, %v840_v16 }
 0x5f7   : > { %v1796_v37 = vpop.permute.xlu1 %657 }
 0x5f8   : > { %922 = vst.msk [vmem:[#allocation3] sm:$0x1] %vm919_vm6, %v1796_v37  ;;  %1174 = vmatmul.mubr.msk.f32.vlgmr.msra.gmra.mrb[4].mxu0 %vm282_vm2, %v1796_v37  ;;  %1056 = vst.msk [vmem:[%s1890_s5 + $0x1] sm:$0x1] (!%p1055_p4), %vm919_vm6, %v1796_v37 }
 0x5f9   : > { %1243 = vmatprep.mubr.msk.f32.mxu0 %vm1536_vm1, %v1537_v15  ;;  %v749_v15 = vld [vmem:[#allocation9 + $0x118] sm:$0xff]  ;;  %1302 = vmatpush3.bf16.msra.mxu0 %v1301_v56 }
 0x5fa   : > { %v1295_v49 = vpack.c.bf16 %v750_v48, %v749_v15  ;;  %1303 = vmatprep.subr.bf16.mxu0 %v1535_v7 }
 0x5fb   : > { %v1804_v38 = vpop.permute.xlu1 %929 }
 0x5fc   : > { %932 = vst.msk [vmem:[#allocation5] sm:$0x1] %vm919_vm6, %v1804_v38  ;;  %1296 = vmatpush3.bf16.msra.mxu1 %v1295_v49  ;;  %1058 = vst.msk [vmem:[%s1890_s5 + $0x3] sm:$0x1] (!%p1055_p4), %vm919_vm6, %v1804_v38 }
 0x5fd   : > { %1297 = vmatprep.subr.bf16.mxu1 %v1535_v7  ;;  %1305 = vmatpush3.bf16.msra.mxu0 %v1304_v58 }
 0x5fe   : > { %1306 = vmatprep.subr.bf16.mxu0 %v1535_v7 }
 0x600   : > { %1299 = vmatpush3.bf16.msra.mxu1 %v1298_v52 }
 0x601   : > { %1308 = vmatpush3.bf16.msra.mxu0 %v1307_v61 }
 0x602   : > { %1309 = vmatprep.subr.bf16.mxu0 %v1535_v7 }
 0x605   : > { %1311 = vmatpush3.bf16.msra.mxu0 %v1310_v11 }
 0x606   : > { %1312 = vmatprep.subr.bf16.mxu0 %v1535_v7 }
 0x609   : > { %1314 = vmatpush3.bf16.msra.mxu0 %v1313_v14 }
 0x60a   : > { %1315 = vmatprep.subr.bf16.mxu0 %v1535_v7 }
 0x60d   : > { %1317 = vmatpush3.bf16.msra.mxu0 %v1316_v19 }
 0x60e   : > { %1318 = vmatprep.subr.bf16.mxu0 %v1535_v7 }
 0x611   : > { %1320 = vmatpush3.bf16.msra.mxu0 %v1319_v21 }
 0x612   : > { %1321 = vmatprep.subr.bf16.mxu0 %v1535_v7 }
 0x615   : > { %1323 = vmatpush3.bf16.msra.mxu0 %v1322_v24 }
 0x6cb   : > { %v727_v0 = vpop.f32.mrb[4].mxu0 }
 0x6cc   : > { %v728_v1 = vadd.f32 %v727_v0, %v655_v63  ;;  %v1175_v2 = vpop.f32.mrb[5].mxu0 }
 0x6ce   : > { %v732_v3 = vmin.f32 %v728_v1, 0.0  ;;  %vm731_vm7 = vcmp.gt.f32.partialorder %v728_v1, 0.0 }
 0x6d0   : > { %v733_v4 = vmul.f32 1.442695, %v732_v3 }
 0x6d2   : > { %1397 = vpow2.f32 %v733_v4 }
 0x6dc   : > { %v1398_v5 = vpop.eup %1397 }
 0x6dd   : > { %v1053_v6 = vadd.f32 -1.0, %v1398_v5 }
 0x6df   : > { %v736_v8 = vsel %vm731_vm7, %v728_v1, %v1053_v6 }
 0x6e0   : > { %1209 = vmatmul.mubr.f32.vlgmr.msra.gmra.mrb[4].mxu1 %v736_v8 }
 0x7b3   : > { %v820_v26 = vpop.f32.mrb[4].mxu1 }
 0x7b4   : > { %v821_v27 = vadd.f32 %v820_v26, %v753_v25  ;;  %v1210_v28 = vpop.f32.mrb[5].mxu1 }
 0x7b6   : > { %v825_v29 = vmin.f32 %v821_v27, 0.0  ;;  %vm824_vm8 = vcmp.gt.f32.partialorder %v821_v27, 0.0 }
 0x7b8   : > { %v826_v30 = vmul.f32 1.442695, %v825_v29 }
 0x7ba   : > { %1399 = vpow2.f32 %v826_v30 }
 0x7c4   : > { %v1400_v31 = vpop.eup %1399 }
 0x7c5   : > { %v1054_v32 = vadd.f32 -1.0, %v1400_v31 }
 0x7c7   : > { %v829_v33 = vsel %vm824_vm8, %v821_v27, %v1054_v32 }
 0x7c8   : > { %1244 = vmatmul.mubr.f32.vlgmr.msra.gmra.mrb[6].mxu0 %v829_v33 }
 0x898   : > { %936 = sbr.rel (%p1055_p4) target bundleno = 2207 (0x89f), region = 52 }
 0x89b   : > { %v913_v35 = vpop.f32.mrb[6].mxu0 }
 0x89c   : > { %v914_v39 = vadd.f32 %v913_v35, %v846_v34  ;;  %v1245_v40 = vpop.f32.mrb[7].mxu0 }
 0x89e   : > { %917 = vst [vmem:[%s246_s26] sm:$0x1] %v914_v39 }
 0x89f PF: > { %s1059_s23 = sshll.u32 %s1593_s22, 4  ;;  %s957_s12 = sshll.u32 %s246_s26, 4  ;;  %s958_s12 = int_to_ptr.vmem [resolvable:$true] %s957_s12 }
 0x8a0   : > { %s1846_s10 = scalar_lea.hbm %s1889_s4, %s1059_s23  ;;  %s945_s29 = scalar_lea.sflag [#allocation8], %s1701_s15 }
 0x8a1   : > { %s1459_s28 = scalar_lea.vmem %s958_s12, 16  ;;  %s1541_s16 = smov [#allocation11]  }
 0x8a2   : > { %p1460_p6 = scmp.ne.s32.totalorder %s958_s12, %s1459_s28  ;;  %s1463_s17 = sshll.u32 %s1541_s16, 4  ;;  %s1464_s17 = int_to_ptr.vmem [resolvable:$false] %s1463_s17 }
 0x8a3   : > { %s1465_s13 = scalar_lea.vmem %s1464_s17, 32  ;;  %p1466_p3 = scmp.lt.s32.totalorder %s958_s12, %s1464_s17 }
 0x8a4   : > { %p1461_p9 = pnand %p1460_p6, %p1656_p12  ;;  %p1467_p7 = scmp.lt.s32.totalorder %s1465_s13, %s1459_s28 }
 0x8a6   : > { %p1462_p13 = pneg %p1461_p9  ;;  %p1468_p10 = por %p1467_p7, %p1466_p3 }
 0x8a8   : > { %p1469_p8 = pnand %p1468_p10, %p1462_p13 }
 0x8aa   : > { %1472 = shalt.err (!%p1469_p8)
}
 0x8ab   : > { %s1473_s22 = scalar_lea.hbm %s1846_s10, 16  ;;  %s1477_s6 = scalar_lea.hbm %s1889_s4, 128 }
 0x8ac   : > { %p1474_p5 = scmp.ne.s32.totalorder %s1846_s10, %s1473_s22  ;;  %p1478_p11 = scmp.lt.u32.totalorder %s1846_s10, %s1889_s4 }
 0x8ad   : > { %p1479_p1 = scmp.lt.u32.totalorder %s1477_s6, %s1473_s22  ;;  %p1481_p6 = scmp.lt.u32.totalorder %s1473_s22, %s1846_s10 }
 0x8ae   : > { %p1475_p0 = pnand %p1474_p5, %p1656_p12 }
 0x8af   : > { %p1480_p4 = por %p1479_p1, %p1478_p11 }
 0x8b0   : > { %p1476_p2 = pneg %p1475_p0 }
 0x8b1   : > { %p1482_p9 = por %p1481_p6, %p1480_p4 }
 0x8b3   : > { %p1483_p13 = pnand %p1482_p9, %p1476_p2 }
 0x8b5   : > { %1486 = shalt.err (!%p1483_p13)
}
 0x8b6   : > { %1330 = dma.vmem_to_hbm [thread:$0]  (%p1656_p12), %s958_s12, 16, %s1846_s10, %s945_s29  }
 0x8b7 PF: > { %p1347_p3 = scmp.ge.s32.totalorder %s1529_s21, 2  ;;  %s975_s24 = sand.u32 1, %s1517_s18  }
 0x8b8   : > { %p1908_p7 = scmp.ne.s32.totalorder %s1895_s25, 0  ;;  %s976_s23 = scalar_lea.sflag [#allocation8], %s975_s24 }
 0x8ba   : > { %p1341_p10 = pnand %p1347_p3, %p1908_p7 }
 0x8bc   : > { %1512 = dma.done.wait (!%p1341_p10), %s976_s23, 16  }
 0x8bd   : > { %1514 = vsyncadd (!%p1341_p10), %s976_s23, 4294967280  ;;  %p20_p8 = scmp.ge.s32.totalorder %s1626_s30, 10   ;;  %s1909_s18 = smov %s1521_s19 }
 0x8be   : > { %s1910_s19 = smov %s1525_s20  ;;  %s1911_s20 = smov %s1652_s8 }
 0x8bf   : > { %s1912_s21 = smov %s1626_s30  ;;  %22 = sbr.rel (!%p20_p8) target bundleno = 6 (0x6), region = 106 }
 0x8c6   :  { %980 = vsyncpa [#allocation7], 1 }
 0x8c7   :  { %982 = vsyncpa [#allocation7 + $0x1], 1 }
 0x8c8   :  { %983 = vsyncpa [#allocation10], 1 }
 0x8c9   :  { %984 = vsyncpa [#allocation8], 1 }
 0x8ca   :  { %986 = vsyncpa [#allocation8 + $0x1], 1 }

</bundles_post_ra>
